<compile_context>
chip_gen: v7x
topology: tpu7x:2x2x1
jax: 0.10.0
libtpu: 0.0.40
codegen_flags: <defaults>
</compile_context>

<pallas_src>
import math
import functools

import jax
import jax.numpy as jnp
from jax.experimental import pallas as pl
from jax.experimental.pallas import tpu as pltpu


# ----------------------------- in-kernel math -----------------------------

def _gelu_tanh(x):
    # GELU(approximate='tanh'); computed in whatever dtype x arrives in.
    c = math.sqrt(2.0 / math.pi)
    return 0.5 * x * (1.0 + jnp.tanh(c * (x + 0.044715 * x * x * x)))


# ----------------------------- Pallas kernels -----------------------------

def mlp_kernel_resident(x_ref, wfc_ref, bfc_ref, wpr_ref, bpr_ref, o_ref, *,
                        ew_dtype):
    """Weights-resident plan: one row tile per step, full weights in VMEM."""
    x = x_ref[...].astype(jnp.bfloat16)
    h = jnp.dot(x, wfc_ref[...], preferred_element_type=jnp.float32)
    h = _gelu_tanh((h + bfc_ref[...]).astype(ew_dtype))
    y = jnp.dot(h.astype(jnp.bfloat16), wpr_ref[...],
                preferred_element_type=jnp.float32)
    o_ref[...] = (y + bpr_ref[...]).astype(o_ref.dtype)


def mlp_kernel_tiled(x_ref, wfc_ref, bfc_ref, wpr_ref, bpr_ref, o_ref, *,
                     ew_dtype):
    """Tiled plan: (row tile i, hidden tile k); accumulate into f32 o_ref."""
    k = pl.program_id(1)

    @pl.when(k == 0)
    def _():
        o_ref[...] = jnp.zeros_like(o_ref)

    x = x_ref[...].astype(jnp.bfloat16)
    h = jnp.dot(x, wfc_ref[...], preferred_element_type=jnp.float32)
    h = _gelu_tanh((h + bfc_ref[...]).astype(ew_dtype))
    o_ref[...] += jnp.dot(h.astype(jnp.bfloat16), wpr_ref[...],
                          preferred_element_type=jnp.float32)

    @pl.when(k == pl.num_programs(1) - 1)
    def _():
        o_ref[...] += bpr_ref[...]


# ----------------------------- helpers -----------------------------

def _round_up(a, b):
    return ((a + b - 1) // b) * b


def _pick_tile(dim, target, align):
    """Largest multiple of `align` <= target that evenly divides dim."""
    t = (min(target, dim) // align) * align
    while t >= align:
        if dim % t == 0:
            return t
        t -= align
    return dim


def _choose_row_tile(m, target):
    """Row tile: multiple of 8, <= target; split so the parallel axis has >=2
    steps when possible (keeps both v7x TensorCores fed)."""
    tm = min(target, _round_up(m, 8))
    tm = max(8, (tm // 8) * 8)
    if m > 8 and _round_up(m, 8) // tm < 2:
        tm = max(8, _round_up((m + 1) // 2, 8))
    return tm


def _default_row_tile():
    try:
        kind = jax.devices()[0].device_kind.lower()
    except Exception:
        return 512
    if "v6" in kind:
        return 768   # v6e needs ~650-720 flops/byte to be MXU-bound
    return 512       # enough margin on v5e (~240) and v7x (~320)


def _default_ew_dtype():
    try:
        kind = jax.devices()[0].device_kind.lower()
    except Exception:
        return jnp.float32
    if ("v6" in kind) or ("v7" in kind):
        return jnp.bfloat16   # bf16 VPU/EUP available
    return jnp.float32        # v5e (and older): keep elementwise in f32


# ----------------------------- weight prep (hoisted, one-time) ---------------

def prepare_params(wfc, bfc, wpr, bpr, *, lane=128):
    """Pad weights/biases to lane-dense shapes and cast weights to bf16.

    Done ONCE, outside the forward hot path.  Padded rows/columns are zero so
    the padded output columns are exactly zero and get sliced off.
    wfc: (E, H), bfc: (H,), wpr: (H, E), bpr: (E,)."""
    E, H = wfc.shape
    E_pad, H_pad = _round_up(E, lane), _round_up(H, lane)
    wfc_p = jnp.zeros((E_pad, H_pad), jnp.bfloat16).at[:E, :H].set(
        wfc.astype(jnp.bfloat16))
    wpr_p = jnp.zeros((H_pad, E_pad), jnp.bfloat16).at[:H, :E].set(
        wpr.astype(jnp.bfloat16))
    bfc_p = jnp.zeros((1, H_pad), jnp.float32).at[0, :H].set(
        bfc.astype(jnp.float32))
    bpr_p = jnp.zeros((1, E_pad), jnp.float32).at[0, :E].set(
        bpr.astype(jnp.float32))
    return wfc_p, bfc_p, wpr_p, bpr_p


# ----------------------------- forward wrapper -----------------------------

def mlp_forward(x, wfc_p, bfc_p, wpr_p, bpr_p, *, row_tile=None,
                hidden_tile=512, weights_resident_max_bytes=16 * 1024 * 1024):
    """x: (..., E) f32.  Prepared (padded, bf16) weights from prepare_params."""
    orig_shape = x.shape
    E = orig_shape[-1]
    E_pad, H_pad = wfc_p.shape
    M = math.prod(orig_shape[:-1])

    if row_tile is None:
        row_tile = _default_row_tile()
    ew_dtype = _default_ew_dtype()

    tm = _choose_row_tile(M, row_tile)
    M_pad = _round_up(M, tm)

    # Activations stay f32; pad rows / embed dim only if necessary.
    x2d = x.reshape(M, E).astype(jnp.float32)
    if (M_pad, E_pad) != (M, E):
        x2d = jnp.zeros((M_pad, E_pad), jnp.float32).at[:M, :E].set(x2d)

    # 2x factor accounts for double-buffered VMEM allocation of each weight.
    weight_bytes_2x = 2 * 2 * (wfc_p.size + wpr_p.size)
    resident = weight_bytes_2x <= weights_resident_max_bytes

    n_row_tiles = M_pad // tm
    flops = 4 * M_pad * E_pad * H_pad
    transcendentals = M_pad * H_pad

    if resident:
        grid = (n_row_tiles,)
        kernel = functools.partial(mlp_kernel_resident, ew_dtype=ew_dtype)
        in_specs = [
            pl.BlockSpec((tm, E_pad), lambda i: (i, 0)),       # x rows
            pl.BlockSpec((E_pad, H_pad), lambda i: (0, 0)),    # fc W (resident)
            pl.BlockSpec((1, H_pad), lambda i: (0, 0)),        # fc bias
            pl.BlockSpec((H_pad, E_pad), lambda i: (0, 0)),    # proj W (resident)
            pl.BlockSpec((1, E_pad), lambda i: (0, 0)),        # proj bias
        ]
        out_specs = pl.BlockSpec((tm, E_pad), lambda i: (i, 0))
        dim_sem = ("parallel",)
        weight_passes = 1
    else:
        th = _pick_tile(H_pad, hidden_tile, 128)
        grid = (n_row_tiles, H_pad // th)
        kernel = functools.partial(mlp_kernel_tiled, ew_dtype=ew_dtype)
        in_specs = [
            pl.BlockSpec((tm, E_pad), lambda i, k: (i, 0)),    # x rows
            pl.BlockSpec((E_pad, th), lambda i, k: (0, k)),    # fc W cols
            pl.BlockSpec((1, th), lambda i, k: (0, k)),        # fc bias cols
            pl.BlockSpec((th, E_pad), lambda i, k: (k, 0)),    # proj W rows
            pl.BlockSpec((1, E_pad), lambda i, k: (0, 0)),     # proj bias
        ]
        out_specs = pl.BlockSpec((tm, E_pad), lambda i, k: (i, 0))
        dim_sem = ("parallel", "arbitrary")
        weight_passes = n_row_tiles

    bytes_accessed = (M_pad * E_pad * 4                       # x (f32)
                      + 2 * (wfc_p.size + wpr_p.size) * weight_passes  # bf16 W
                      + (bfc_p.size + bpr_p.size) * 4         # biases
                      + M_pad * E_pad * 4)                    # output (f32)

    out = pl.pallas_call(
        kernel,
        out_shape=jax.ShapeDtypeStruct((M_pad, E_pad), jnp.float32),
        grid_spec=pltpu.PrefetchScalarGridSpec(
            num_scalar_prefetch=0,
            grid=grid,
            in_specs=in_specs,
            out_specs=out_specs,
        ),
        compiler_params=pltpu.CompilerParams(
            dimension_semantics=dim_sem,
            vmem_limit_bytes=48 * 1024 * 1024,  # under v7x's 64 MiB physical
        ),
        cost_estimate=pl.CostEstimate(
            flops=flops,
            transcendentals=transcendentals,
            bytes_accessed=bytes_accessed,
        ),
    )(x2d, wfc_p, bfc_p, wpr_p, bpr_p)

    return out[:M, :E].reshape(orig_shape)


# ----------------------------- params & reference -----------------------------

def init_params(key, E, X):
    H = X * E
    k1, k2, k3, k4 = jax.random.split(key, 4)
    std = 0.02
    # Stored pre-transposed to (in_features, out_features).
    wfc = std * jax.random.normal(k1, (E, H), jnp.float32)
    bfc = std * jax.random.normal(k2, (H,), jnp.float32)
    wpr = std * jax.random.normal(k3, (H, E), jnp.float32)
    bpr = std * jax.random.normal(k4, (E,), jnp.float32)
    return wfc, bfc, wpr, bpr


def mlp_reference(x, wfc, bfc, wpr, bpr):
    h = _gelu_tanh(x @ wfc + bfc)
    return h @ wpr + bpr


# ----------------------------- main -----------------------------

if __name__ == "__main__":
    B, T, E, X = 2, 8, 32, 4  # batch, seq, nn_embed, nn_mlp_expansion

    key = jax.random.PRNGKey(0)
    kx, kp = jax.random.split(key)
    wfc, bfc, wpr, bpr = init_params(kp, E, X)
    x = jax.random.normal(kx, (B, T, E), jnp.float32)

    # One-time weight prep (pad to lane-dense + bf16 cast), hoisted out of the
    # forward hot path.
    wfc_p, bfc_p, wpr_p, bpr_p = prepare_params(wfc, bfc, wpr, bpr)

    fwd = jax.jit(mlp_forward)
    out = fwd(x, wfc_p, bfc_p, wpr_p, bpr_p)
    out = jax.block_until_ready(out)

    ref = mlp_reference(x, wfc, bfc, wpr, bpr)
    assert out.shape == (B, T, E)
    max_err = jnp.max(jnp.abs(out - ref))
    assert jnp.allclose(out, ref, atol=2e-2, rtol=2e-2), f"max abs diff {max_err}"

    print("KERNEL_OK")
</pallas_src>

<mosaic_0001>
module attributes {stable_mosaic.version = 11 : i64} {
  func.func @mlp_kernel_resident(%arg0: i32, %arg1: memref<8x128xf32, #tpu.memory_space<vmem>>, %arg2: memref<128x128xbf16, #tpu.memory_space<vmem>>, %arg3: memref<1x128xf32, #tpu.memory_space<vmem>>, %arg4: memref<128x128xbf16, #tpu.memory_space<vmem>>, %arg5: memref<1x128xf32, #tpu.memory_space<vmem>>, %arg6: memref<8x128xf32, #tpu.memory_space<vmem>>) attributes {dimension_semantics = [#tpu.dimension_semantics<parallel>], iteration_bounds = array<i64: 2>, scalar_prefetch = 0 : i64, scratch_operands = 0 : i64, tpu.core_type = #tpu.core_type<tc>, window_params = [{transform_indices = @transform_0, window_bounds = array<i64: 8, 128>}, {pipeline_mode = #tpu.pipeline_mode<synchronous>, transform_indices = @transform_1, window_bounds = array<i64: 128, 128>}, {pipeline_mode = #tpu.pipeline_mode<synchronous>, transform_indices = @transform_2, window_bounds = array<i64: 1, 128>}, {pipeline_mode = #tpu.pipeline_mode<synchronous>, transform_indices = @transform_3, window_bounds = array<i64: 128, 128>}, {pipeline_mode = #tpu.pipeline_mode<synchronous>, transform_indices = @transform_4, window_bounds = array<i64: 1, 128>}, {transform_indices = @transform_5, window_bounds = array<i64: 8, 128>}]} {
    %c0 = arith.constant 0 : index
    %c0_0 = arith.constant 0 : index
    %0 = vector.load %arg1[%c0, %c0_0] : memref<8x128xf32, #tpu.memory_space<vmem>>, vector<8x128xf32>
    %1 = arith.truncf %0 : vector<8x128xf32> to vector<8x128xbf16>
    %c0_1 = arith.constant 0 : index
    %c0_2 = arith.constant 0 : index
    %2 = vector.load %arg2[%c0_1, %c0_2] : memref<128x128xbf16, #tpu.memory_space<vmem>>, vector<128x128xbf16>
    %cst = arith.constant dense<0.000000e+00> : vector<8x128xf32>
    %3 = tpu.matmul %1, %2, %cst {dimension_numbers = #tpu.dot_dimension_numbers<[1], [0], [0], [1], [0, 0, 1, 1], [], []>} : vector<8x128xbf16>, vector<128x128xbf16>, vector<8x128xf32> -> vector<8x128xf32>
    %c0_3 = arith.constant 0 : index
    %c0_4 = arith.constant 0 : index
    %4 = vector.load %arg3[%c0_3, %c0_4] : memref<1x128xf32, #tpu.memory_space<vmem>>, vector<1x128xf32>
    %5 = vector.broadcast %4 : vector<1x128xf32> to vector<8x128xf32>
    %6 = arith.addf %3, %5 : vector<8x128xf32>
    %cst_5 = arith.constant 5.000000e-01 : f32
    %7 = vector.broadcast %cst_5 : f32 to vector<8x128xf32>
    %8 = arith.mulf %7, %6 : vector<8x128xf32>
    %cst_6 = arith.constant 4.471500e-02 : f32
    %9 = vector.broadcast %cst_6 : f32 to vector<8x128xf32>
    %10 = arith.mulf %9, %6 : vector<8x128xf32>
    %11 = arith.mulf %10, %6 : vector<8x128xf32>
    %12 = arith.mulf %11, %6 : vector<8x128xf32>
    %13 = arith.addf %6, %12 : vector<8x128xf32>
    %cst_7 = arith.constant 0.797884583 : f32
    %14 = vector.broadcast %cst_7 : f32 to vector<8x128xf32>
    %15 = arith.mulf %14, %13 : vector<8x128xf32>
    %16 = math.tanh %15 : vector<8x128xf32>
    %cst_8 = arith.constant 1.000000e+00 : f32
    %17 = vector.broadcast %cst_8 : f32 to vector<8x128xf32>
    %18 = arith.addf %17, %16 : vector<8x128xf32>
    %19 = arith.mulf %8, %18 : vector<8x128xf32>
    %20 = arith.truncf %19 : vector<8x128xf32> to vector<8x128xbf16>
    %c0_9 = arith.constant 0 : index
    %c0_10 = arith.constant 0 : index
    %21 = vector.load %arg4[%c0_9, %c0_10] : memref<128x128xbf16, #tpu.memory_space<vmem>>, vector<128x128xbf16>
    %cst_11 = arith.constant dense<0.000000e+00> : vector<8x128xf32>
    %22 = tpu.matmul %20, %21, %cst_11 {dimension_numbers = #tpu.dot_dimension_numbers<[1], [0], [0], [1], [0, 0, 1, 1], [], []>} : vector<8x128xbf16>, vector<128x128xbf16>, vector<8x128xf32> -> vector<8x128xf32>
    %c0_12 = arith.constant 0 : index
    %c0_13 = arith.constant 0 : index
    %23 = vector.load %arg5[%c0_12, %c0_13] : memref<1x128xf32, #tpu.memory_space<vmem>>, vector<1x128xf32>
    %24 = vector.broadcast %23 : vector<1x128xf32> to vector<8x128xf32>
    %25 = arith.addf %22, %24 : vector<8x128xf32>
    %c0_14 = arith.constant 0 : index
    %c0_15 = arith.constant 0 : index
    %26 = vector.load %arg6[%c0_14, %c0_15] : memref<8x128xf32, #tpu.memory_space<vmem>>, vector<8x128xf32>
    tpu.vector_store %arg6[%c0_14, %c0_15], %25 {strides = array<i32>} : memref<8x128xf32, #tpu.memory_space<vmem>>, vector<8x128xf32>,
    return
  }
  func.func @transform_0(%arg0: i32) -> (i32, i32) {
    %c0_i32 = arith.constant 0 : i32
    %c0_i32_0 = arith.constant 0 : i32
    return %arg0, %c0_i32 : i32, i32
  }
  func.func @transform_1(%arg0: i32) -> (i32, i32) {
    %c0_i32 = arith.constant 0 : i32
    %c0_i32_0 = arith.constant 0 : i32
    %c0_i32_1 = arith.constant 0 : i32
    return %c0_i32, %c0_i32_0 : i32, i32
  }
  func.func @transform_2(%arg0: i32) -> (i32, i32) {
    %c0_i32 = arith.constant 0 : i32
    %c0_i32_0 = arith.constant 0 : i32
    %c0_i32_1 = arith.constant 0 : i32
    return %c0_i32, %c0_i32_0 : i32, i32
  }
  func.func @transform_3(%arg0: i32) -> (i32, i32) {
    %c0_i32 = arith.constant 0 : i32
    %c0_i32_0 = arith.constant 0 : i32
    %c0_i32_1 = arith.constant 0 : i32
    return %c0_i32, %c0_i32_0 : i32, i32
  }
  func.func @transform_4(%arg0: i32) -> (i32, i32) {
    %c0_i32 = arith.constant 0 : i32
    %c0_i32_0 = arith.constant 0 : i32
    %c0_i32_1 = arith.constant 0 : i32
    return %c0_i32, %c0_i32_0 : i32, i32
  }
  func.func @transform_5(%arg0: i32) -> (i32, i32) {
    %c0_i32 = arith.constant 0 : i32
    %c0_i32_0 = arith.constant 0 : i32
    return %arg0, %c0_i32 : i32, i32
  }
}

</mosaic_0001>

<bundles_post_ra>
// kernel: mlp_forward.1
= control target key start
LH: loop header
LB: loop body
LE: loop exit
PB: predicated region body
PF: predicated region fallthrough
CT: control target
= control target key end

     0   :  { %10 = vsyncpa [#allocation3], 0  ;;  %s739_s18 = smov 0   ;;  %s832_s0 = inlined_call_operand.vmem [shape: f32[16,128], index: 0, kind: input, shape index: {}]   ;;  %s833_s1 = inlined_call_operand.vmem [shape: bf16[128,128], index: 1, kind: input, shape index: {}]   ;;  %s834_s2 = inlined_call_operand.vmem [shape: f32[1,128], index: 2, kind: input, shape index: {}]   ;;  %s835_s3 = inlined_call_operand.hbm [shape: bf16[128,128], index: 3, kind: input, shape index: {}]   ;;  %s836_s4 = inlined_call_operand.vmem [shape: f32[1,128], index: 4, kind: input, shape index: {}]   ;;  %s837_s5 = inlined_call_operand.vmem [shape: f32[16,128], index: 5, kind: output, shape index: {}]  }
   0x1 LB: > { %s745_s19 = sadd.s32 4294967295, %s702_s18   ;;  %p538_p0 = scmp.ge.s32.totalorder %s702_s18, 1  ;;  %s702_s18 = sphi %s739_s18, %s16_s18  }
   0x2   : > { %p157_p1 = scmp.lt.s32.totalorder %s702_s18, 3  ;;  %s704_s20 = smov [#allocation2]  }
   0x3   : > { %s175_s21 = sshll.u32 %s704_s20, 4  ;;  %p838_p3 = scmp.eq.s32.totalorder %s745_s19, 0  ;;  %s176_s21 = int_to_ptr.vmem [resolvable:$true] %s175_s21 }
   0x4   : > { %p749_p2 = pnand %p538_p0, %p157_p1  ;;  %s664_s26 = scalar_lea.hbm %s835_s3, 1024 }
   0x5   : > { %p665_p6 = scmp.ne.s32.totalorder %s835_s3, %s664_s26  ;;  %p671_p10 = scmp.lt.u32.totalorder %s664_s26, %s835_s3 }
   0x6   : > { %s840_s22 = scalar_select %p749_p2, 1, 0 }
   0x7   : > { %p627_p4 = pneg %p749_p2 }
   0x9   : > { %p758_p5 = pnand %p838_p3, %p627_p4 }
   0xb   : > { %p666_p7 = pneg %p758_p5 }
   0xd   : > { %p667_p8 = pnand %p666_p7, %p665_p6 }
   0xf   : > { %p668_p9 = pneg %p667_p8 }
  0x11   : > { %p673_p11 = pnand %p671_p10, %p668_p9 }
  0x13   : > { %676 = shalt.err (!%p673_p11)
}
  0x14   : > { %s677_s6 = scalar_lea.vmem %s176_s21, 1024  ;;  %p685_p1 = scmp.lt.s32.totalorder %s176_s21, %s176_s21 }
  0x15   : > { %p678_p12 = scmp.ne.s32.totalorder %s176_s21, %s677_s6  ;;  %p686_p4 = scmp.lt.s32.totalorder %s677_s6, %s677_s6 }
  0x17   : > { %p680_p13 = pnand %p678_p12, %p666_p7  ;;  %p687_p3 = por %p686_p4, %p685_p1 }
  0x19   : > { %p681_p0 = pneg %p680_p13 }
  0x1b   : > { %p688_p2 = pnand %p687_p3, %p681_p0 }
  0x1d   : > { %691 = shalt.err (!%p688_p2)
}
  0x1e   : > { %s705_s7 = smov 64   ;;  %s706_s8 = smov 4  }
  0x1f   : > { %630 = dma.hbm_to_vmem [thread:$0]  (!%p758_p5), %s835_s3, 1024, %s176_s21, [#allocation3], %s705_s7, %s705_s7, %s706_s8  }
  0x20   : > { %p842_p6 = scmp.ne.s32.totalorder %s840_s22, 0 }
  0x21   : > { %p843_p8 = scmp.eq.s32.totalorder (!%p842_p6), %s745_s19, 0 }
  0x22   : > { %201 = sbr.rel (%p842_p6) target bundleno = 532 (0x214), region = 40 }
  0x29   : > { %697 = dma.done.wait (%p843_p8), [#allocation3], 1024   ;;  %p844_p7 = pmov %p843_p8 }
  0x2a   : > { %v707_v0 = vmov 0.0   ;;  %vm708_vm0 = vmmov 0   ;;  %v646_v1 = vld [vmem:[%s833_s1] sm:$0xff]   ;;  %v647_v2 = vld [vmem:[%s833_s1 + $0x8] sm:$0xff]   ;;  %v648_v3 = vld [vmem:[%s833_s1 + $0x10] sm:$0xff]   ;;  %p227_p2 = scmp.lt.s32.totalorder %s745_s19, 1 }
  0x2b   : > { %699 = vsyncadd (%p844_p7), [#allocation3], 4294966272  ;;  %583 = vmatprep.subr.bf16.mxu0 %v707_v0  ;;  %599 = vmatprep.mubr.msk.bf16.mxu0 %vm708_vm0, %v707_v0  ;;  %v649_v4 = vld [vmem:[%s833_s1 + $0x18] sm:$0xff]   ;;  %v654_v5 = vld [vmem:[#allocation2] sm:$0xff]  }
  0x2c   : > { %603 = vmatprep.subr.bf16.mxu1 %v707_v0  ;;  %619 = vmatprep.mubr.msk.bf16.mxu1 %vm708_vm0, %v707_v0  ;;  %v650_v6 = vld [vmem:[%s833_s1 + $0x20] sm:$0xff]   ;;  %s846_s19 = smov (!%p227_p2, %s745_s19), 1  ;;  %v651_v7 = vld [vmem:[%s833_s1 + $0x28] sm:$0xff]   ;;  %v652_v8 = vld [vmem:[%s833_s1 + $0x30] sm:$0xff]  }
  0x2d   : > { %584 = vmatpush3.bf16.msra.mxu0 %v646_v1  ;;  %604 = vmatpush3.bf16.msra.mxu1 %v654_v5  ;;  %s543_s25 = sshll.u32 %s846_s19, 3  ;;  %v653_v9 = vld [vmem:[%s833_s1 + $0x38] sm:$0xff]   ;;  %v655_v12 = vld [vmem:[#allocation2 + $0x8] sm:$0xff]   ;;  %v656_v13 = vld [vmem:[#allocation2 + $0x10] sm:$0xff]  }
  0x2e   : > { %585 = vmatprep.subr.bf16.mxu0 %v707_v0  ;;  %605 = vmatprep.subr.bf16.mxu1 %v707_v0  ;;  %s230_s30 = scalar_lea.vmem %s832_s0, %s543_s25  ;;  %v657_v14 = vld [vmem:[#allocation2 + $0x18] sm:$0xff]   ;;  %v658_v15 = vld [vmem:[#allocation2 + $0x20] sm:$0xff]   ;;  %v659_v16 = vld [vmem:[#allocation2 + $0x28] sm:$0xff]   ;;  %s234_s14 = scalar_lea.vmem %s837_s5, %s543_s25 }
  0x2f   : > { %v236_v10 = vld [vmem:[%s230_s30] sm:$0xff]  ;;  %v660_v17 = vld [vmem:[#allocation2 + $0x30] sm:$0xff]   ;;  %v661_v18 = vld [vmem:[#allocation2 + $0x38] sm:$0xff]  }
  0x30   : > { %v237_v11 = vpack.c.bf16 %v236_v10, %v236_v10  ;;  %v545_v19 = vld [vmem:[%s834_s2] ss:$0 sm:$0xff] }
  0x31   : > { %586 = vmatpush3.bf16.msra.mxu0 %v647_v2  ;;  %606 = vmatpush3.bf16.msra.mxu1 %v655_v12  ;;  %v554_v35 = vld [vmem:[%s836_s4] ss:$0 sm:$0xff] }
  0x32   : > { %587 = vmatprep.subr.bf16.mxu0 %v707_v0  ;;  %607 = vmatprep.subr.bf16.mxu1 %v707_v0 }
  0x35   : > { %588 = vmatpush3.bf16.msra.mxu0 %v648_v3  ;;  %608 = vmatpush3.bf16.msra.mxu1 %v656_v13 }
  0x36   : > { %589 = vmatprep.subr.bf16.mxu0 %v707_v0  ;;  %609 = vmatprep.subr.bf16.mxu1 %v707_v0 }
  0x39   : > { %590 = vmatpush3.bf16.msra.mxu0 %v649_v4  ;;  %610 = vmatpush3.bf16.msra.mxu1 %v657_v14 }
  0x3a   : > { %591 = vmatprep.subr.bf16.mxu0 %v707_v0  ;;  %611 = vmatprep.subr.bf16.mxu1 %v707_v0 }
  0x3d   : > { %592 = vmatpush3.bf16.msra.mxu0 %v650_v6  ;;  %612 = vmatpush3.bf16.msra.mxu1 %v658_v15 }
  0x3e   : > { %593 = vmatprep.subr.bf16.mxu0 %v707_v0  ;;  %613 = vmatprep.subr.bf16.mxu1 %v707_v0 }
  0x41   : > { %594 = vmatpush3.bf16.msra.mxu0 %v651_v7  ;;  %614 = vmatpush3.bf16.msra.mxu1 %v659_v16 }
  0x42   : > { %595 = vmatprep.subr.bf16.mxu0 %v707_v0  ;;  %615 = vmatprep.subr.bf16.mxu1 %v707_v0 }
  0x45   : > { %596 = vmatpush3.bf16.msra.mxu0 %v652_v8  ;;  %616 = vmatpush3.bf16.msra.mxu1 %v660_v17 }
  0x46   : > { %597 = vmatprep.subr.bf16.mxu0 %v707_v0  ;;  %617 = vmatprep.subr.bf16.mxu1 %v707_v0 }
  0x49   : > { %598 = vmatpush3.bf16.msra.mxu0 %v653_v9  ;;  %618 = vmatpush3.bf16.msra.mxu1 %v661_v18 }
  0x4c   : > { %600 = vmatmul.mubr.bf16.vlgmr.msra.gmra.mrb[0].mxu0 %v237_v11 }
 0x11f   : > { %v343_v20 = vpop.f32.mrb[0].mxu0 }
 0x120   : > { %v344_v21 = vadd.f32 %v545_v19, %v343_v20  ;;  %v601_v22 = vpop.f32.mrb[1].mxu0 }
 0x121   : > { %v346_v23 = vpop.f32.mrb[2].mxu0 }
 0x122   : > { %v350_v24 = vmul.f32 0.044715, %v344_v21  ;;  %v602_v25 = vpop.f32.mrb[3].mxu0  ;;  %v349_v31 = vmul.f32 0.5, %v344_v21 }
 0x124   : > { %v351_v26 = vmul.f32 %v350_v24, %v344_v21 }
 0x126   : > { %v352_v27 = vmul.f32 %v351_v26, %v344_v21 }
 0x128   : > { %v353_v28 = vadd.f32 %v352_v27, %v344_v21 }
 0x12a   : > { %v354_v29 = vmul.f32 0.7978846, %v353_v28 }
 0x12c   : > { %662 = vtanh.f32 %v354_v29 }
 0x136   : > { %v663_v30 = vpop.eup %662 }
 0x137   : > { %v356_v32 = vadd.f32 1.0, %v663_v30 }
 0x139   : > { %v357_v33 = vmul.f32 %v356_v32, %v349_v31 }
 0x13b   : > { %v358_v34 = vpack.c.bf16 %v357_v33, %v357_v33 }
 0x13d   : > { %620 = vmatmul.mubr.bf16.vlgmr.msra.gmra.mrb[0].mxu1 %v358_v34 }
 0x210   : > { %v464_v36 = vpop.f32.mrb[0].mxu1 }
 0x211   : > { %v465_v37 = vadd.f32 %v554_v35, %v464_v36  ;;  %v621_v38 = vpop.f32.mrb[1].mxu1 }
 0x212   : > { %v467_v39 = vpop.f32.mrb[2].mxu1 }
 0x213   : > { %470 = vst [vmem:[%s234_s14] sm:$0xff] %v465_v37  ;;  %v622_v40 = vpop.f32.mrb[3].mxu1 }
 0x214 PF: > { %s16_s18 = sadd.s32 1, %s702_s18  }
 0x215   : > { %p13_p3 = scmp.ge.s32.totalorder %s16_s18, 4  }
 0x217   :  { %15 = sbr.rel (!%p13_p3) target bundleno = 1 (0x1), region = 75 }
 0x21e   :  { %490 = vsyncpa [#allocation3], 1 }
 0x21f   :  { %492 = vsyncpa [#allocation3 + $0x1], 1 }

</bundles_post_ra>
